<compile_context>
chip_gen: v7x
topology: tpu7x:2x2x1
jax: 0.10.0
libtpu: 0.0.40
codegen_flags: <defaults>
</compile_context>

<pallas_src>
import jax
import jax.numpy as jnp
from jax.experimental import pallas as pl
from jax.experimental.pallas import tpu as pltpu


def _dma_copy_kernel(src_hbm_ref, dst_hbm_ref, copy_sem):
    # One whole-array HBM->HBM DMA: the true bandwidth floor for a copy, with
    # zero grid-step / VMEM-staging overhead and no tiling constraints.
    cp = pltpu.make_async_copy(src_hbm_ref, dst_hbm_ref, copy_sem)
    cp.start()
    cp.wait()


def _materialize_copy(encoding: jax.Array) -> jax.Array:
    nbytes = encoding.size * jnp.dtype(encoding.dtype).itemsize
    return pl.pallas_call(
        _dma_copy_kernel,
        out_shape=jax.ShapeDtypeStruct(encoding.shape, encoding.dtype),
        in_specs=[pl.BlockSpec(memory_space=pl.ANY)],
        out_specs=pl.BlockSpec(memory_space=pl.ANY),
        scratch_shapes=[pltpu.SemaphoreType.DMA(())],
        cost_estimate=pl.CostEstimate(
            flops=0, transcendentals=0, bytes_accessed=2 * nbytes
        ),
    )(encoding)


def relative_positional_encoding_forward(
    encoding: jax.Array, *, materialize: bool = False
) -> jax.Array:
    """Pallas equivalent of RelativePositionalEncoding.forward().

    encoding: (neighbor_size, neighbor_size, dim) parameter array.

    Default (hot) path returns the parameter itself — bit-identical semantics
    to the PyTorch module (which returns the parameter by reference) since JAX
    arrays are immutable.  Set materialize=True to get a freshly allocated
    copy produced by a single HBM->HBM DMA inside a Pallas kernel.
    """
    if not materialize:
        return encoding
    return _materialize_copy(encoding)


class RelativePositionalEncodingPallas:
    """Synthetic JAX/Pallas mirror of the PyTorch module."""

    def __init__(self, neighbor_size: int, dim: int, key: jax.Array):
        self.neighbor_size = neighbor_size
        self.dim = dim
        # Mirrors torch.randn(neighbor_size, neighbor_size, dim).
        self.encoding = jax.random.normal(
            key, (neighbor_size, neighbor_size, dim), dtype=jnp.float32
        )

    def __call__(self, materialize: bool = False) -> jax.Array:
        return relative_positional_encoding_forward(
            self.encoding, materialize=materialize
        )


if __name__ == "__main__":
    key = jax.random.PRNGKey(0)
    neighbor_size = 8
    dim = 32

    module = RelativePositionalEncodingPallas(neighbor_size, dim, key)

    # Hot path: identity return (no kernel, no HBM traffic).
    out_fast = jax.block_until_ready(module())
    assert out_fast.shape == (neighbor_size, neighbor_size, dim)
    assert out_fast.dtype == jnp.float32
    assert bool(jnp.array_equal(out_fast, module.encoding))

    # Pallas kernel path: fresh materialized buffer via one HBM->HBM DMA.
    out_copy = jax.block_until_ready(module(materialize=True))
    assert out_copy.shape == (neighbor_size, neighbor_size, dim)
    assert out_copy.dtype == jnp.float32
    assert bool(jnp.array_equal(out_copy, module.encoding))

    print("KERNEL_OK")
</pallas_src>

<mosaic_0001>
module attributes {stable_mosaic.version = 11 : i64} {
  func.func @_dma_copy_kernel(%arg0: memref<8x8x32xf32, #tpu.memory_space<any>>, %arg1: memref<8x8x32xf32, #tpu.memory_space<any>>, %arg2: memref<!tpu.dma_semaphore, #tpu.memory_space<semaphore_mem>>) attributes {dimension_semantics = [], scalar_prefetch = 0 : i64, scratch_operands = 1 : i64, tpu.core_type = #tpu.core_type<tc>} {
    tpu.enqueue_dma source(%arg0 : memref<8x8x32xf32, #tpu.memory_space<any>>) target(%arg1 : memref<8x8x32xf32, #tpu.memory_space<any>>) target_semaphore(%arg2 : memref<!tpu.dma_semaphore, #tpu.memory_space<semaphore_mem>>)
    tpu.wait_dma2 semaphore(%arg2 : memref<!tpu.dma_semaphore, #tpu.memory_space<semaphore_mem>>) src(%arg0 : memref<8x8x32xf32, #tpu.memory_space<any>>) dst(%arg1 : memref<8x8x32xf32, #tpu.memory_space<any>>)
    return
  }
}

</mosaic_0001>

<bundles_post_ra>
// kernel: tpu_custom_call.1
= control target key start
LH: loop header
LB: loop body
LE: loop exit
PB: predicated region body
PF: predicated region fallthrough
CT: control target
= control target key end

     0   :  { %s35_s6 = smov [#allocation2]   ;;  %s36_s7 = smov [#allocation3]   ;;  %s54_s0 = inlined_call_operand.hbm [shape: f32[8,8,32], index: 0, kind: input, shape index: {}]   ;;  %s55_s1 = inlined_call_operand.hbm [shape: f32[8,8,32], index: 1, kind: output, shape index: {}]  }
   0x1   :  { %s37_s8 = smov 0  }
   0x2   :  { %18 = dma.general %s54_s0, 1024, %s55_s1, %s35_s6, %s36_s7, [#allocation4], %s37_s8, 0  }
   0x3   :  { %33 = dma.done.wait [#allocation2], 1024 }
   0x4   :  { %34 = vsyncadd [#allocation2], 4294966272 }
   0x5   :  { %23 = vsyncmov [#allocation2] }
   0x8   :  { %s24_s13 = vpop.sfrf %23 }
   0x9   :  { %p29_p0 = scmp.ne.s32.totalorder %s24_s13, 0 }
   0xb   :  { %28 = shalt.err (%p29_p0)  }

</bundles_post_ra>
